<compile_context>
chip_gen: v6e
topology: v6e:2x2x1
jax: 0.10.0
libtpu: 0.0.40
codegen_flags: <defaults>
</compile_context>

<pallas_src>
import functools

import jax
import jax.numpy as jnp
import numpy as np
from jax.experimental import pallas as pl
from jax.experimental.pallas import tpu as pltpu


def _focal_loss_kernel(alpha_ref, logits_ref, target_ref, out_ref, *,
                       gamma, ignore_val, hw, tile_p, has_alpha, alpha_len,
                       needs_lane_mask):
    p = pl.program_id(1)          # pixel-tile index

    logits = logits_ref[...].astype(jnp.float32)          # (C, tile_p)
    tgt = target_ref[...].astype(jnp.int32)               # (1, tile_p)

    # remap_tensor_digit(target, {255: 0})
    tgt = jnp.where(tgt == 255, 0, tgt)

    # log-softmax over the class (sublane) axis, independently per pixel (lane)
    m = jnp.max(logits, axis=0, keepdims=True)            # (1, tile_p)
    z = logits - m
    lse = jnp.log(jnp.sum(jnp.exp(z), axis=0, keepdims=True))

    # gather the target-class logit via a one-hot select (no dynamic gather)
    row = jax.lax.broadcasted_iota(jnp.int32, z.shape, 0)  # (C, tile_p)
    z_t = jnp.sum(jnp.where(row == tgt, z, 0.0), axis=0, keepdims=True)
    logpt = z_t - lse                                       # (1, tile_p)
    pt = jnp.exp(logpt)

    if has_alpha:
        # at = alpha[target]; alpha lives in SMEM (scalar prefetch), small len.
        # NOTE: targets >= alpha_len get weight 0 (PyTorch's gather would
        # raise for the scalar-alpha case with >2 classes).
        at = jnp.zeros_like(logpt)
        for c in range(alpha_len):
            at = jnp.where(tgt == c, alpha_ref[c], at)
        logpt = logpt * at

    one_minus_pt = 1.0 - pt
    g = float(gamma)
    if g == 0.0:
        focal = jnp.ones_like(pt)
    elif g.is_integer() and 0.0 < g <= 8.0:
        focal = one_minus_pt
        for _ in range(int(g) - 1):
            focal = focal * one_minus_pt
    else:
        focal = one_minus_pt ** g

    loss = -1.0 * focal * logpt                             # (1, tile_p)

    # ignore_index mask (on the remapped target, as in the reference), fused
    # with the tail lane mask; jnp.where keeps tail-lane NaN/garbage out.
    valid = tgt != ignore_val
    if needs_lane_mask:
        col = p * tile_p + jax.lax.broadcasted_iota(jnp.int32, loss.shape, 1)
        valid = jnp.logical_and(valid, col < hw)
    loss = jnp.where(valid, loss, 0.0)

    # Partial sum for this (batch, pixel-tile) block, written to lane 0 of a
    # lane-dense (1, 128) output block (remaining lanes are exact zeros).
    s = jnp.sum(loss)
    lane = jax.lax.broadcasted_iota(jnp.int32, (1, 128), 1)
    out_ref[...] = jnp.where(lane == 0, s, 0.0)


def _pick_tile(hw, c, itemsize):
    """Pixel-tile (lane) width: ~2 MiB of logits per block, multiple of 128."""
    budget = 2 * 1024 * 1024
    t = budget // max(c * itemsize, 1)
    t = max(256, min(65536, t))
    t = (t // 128) * 128
    if hw <= t:
        return hw            # full dim — always a legal block shape
    return t


def focal_loss(logits_nchw, target_nhw, *, gamma=0.0, alpha=None,
               size_average=True, ignore_index=None, tile_p=None):
    """Pallas TPU FocalLoss forward.

    logits_nchw: (N, C, H, W) float logits (any float dtype; upcast in-kernel)
    target_nhw : (N, H, W) integer class indices (255 is remapped to 0)
    """
    N, C, H, W = logits_nchw.shape
    HW = H * W

    # NCHW -> (N, C, H*W): contiguous collapse, no data movement; the class
    # axis is already leading and pixels land on the lane axis.
    x = logits_nchw.reshape(N, C, HW)
    t = target_nhw.reshape(N, 1, HW).astype(jnp.int32)

    if tile_p is None:
        tile_p = _pick_tile(HW, C, jnp.dtype(x.dtype).itemsize)
    grid_p = pl.cdiv(HW, tile_p)
    needs_lane_mask = (grid_p * tile_p != HW)

    # alpha handling mirrors the PyTorch __init__:
    #   float/int -> [alpha, 1 - alpha]; list -> tensor; None -> no weighting
    has_alpha = alpha is not None
    if alpha is None:
        alpha_vec = jnp.ones((1,), jnp.float32)            # dummy, unused
    elif isinstance(alpha, (float, int)):
        alpha_vec = jnp.asarray([float(alpha), 1.0 - float(alpha)], jnp.float32)
    else:
        alpha_vec = jnp.asarray(alpha, jnp.float32).reshape(-1)
    alpha_len = int(alpha_vec.shape[0])

    ignore_val = -1 if ignore_index is None else int(ignore_index)  # -1 never matches

    kernel = functools.partial(
        _focal_loss_kernel, gamma=float(gamma), ignore_val=ignore_val,
        hw=HW, tile_p=tile_p, has_alpha=has_alpha, alpha_len=alpha_len,
        needs_lane_mask=needs_lane_mask)

    partials = pl.pallas_call(
        kernel,
        out_shape=jax.ShapeDtypeStruct((N, grid_p, 1, 128), jnp.float32),
        grid_spec=pltpu.PrefetchScalarGridSpec(
            num_scalar_prefetch=1,                 # alpha -> SMEM, loaded once
            grid=(N, grid_p),
            in_specs=[
                pl.BlockSpec((None, C, tile_p), lambda n, p, a: (n, 0, p)),  # logits
                pl.BlockSpec((None, 1, tile_p), lambda n, p, a: (n, 0, p)),  # targets
            ],
            out_specs=pl.BlockSpec((None, None, 1, 128),
                                   lambda n, p, a: (n, p, 0, 0)),
        ),
        compiler_params=pltpu.CompilerParams(
            dimension_semantics=("parallel", "parallel")),
    )(alpha_vec, x, t)

    total = jnp.sum(partials)                      # tiny (N*grid_p) reduction in XLA
    n_pix = N * HW
    # PyTorch .mean() divides by the total number of pixels (including masked)
    return total / n_pix if size_average else total


def _focal_loss_reference(logits_nchw, target_nhw, *, gamma, alpha,
                          size_average, ignore_index):
    """Pure-JAX reference mirroring the PyTorch code, for verification."""
    N, C, H, W = logits_nchw.shape
    x = jnp.transpose(logits_nchw, (0, 2, 3, 1)).reshape(-1, C).astype(jnp.float32)
    t = target_nhw.reshape(-1).astype(jnp.int32)
    t = jnp.where(t == 255, 0, t)
    logp = jax.nn.log_softmax(x, axis=1)
    logpt = jnp.take_along_axis(logp, t[:, None], axis=1)[:, 0]
    pt = jnp.exp(logpt)
    if alpha is not None:
        if isinstance(alpha, (float, int)):
            a = jnp.asarray([float(alpha), 1.0 - float(alpha)], jnp.float32)
        else:
            a = jnp.asarray(alpha, jnp.float32)
        logpt = logpt * a[t]
    loss = -1.0 * (1.0 - pt) ** gamma * logpt
    if ignore_index is not None:
        loss = loss * (t != ignore_index).astype(jnp.float32)
    return loss.mean() if size_average else loss.sum()


def _check(logits, target, **kw):
    tile_p = kw.pop("tile_p", None)
    got = jax.block_until_ready(focal_loss(logits, target, tile_p=tile_p, **kw))
    ref = jax.block_until_ready(_focal_loss_reference(logits, target, **kw))
    assert np.allclose(np.asarray(got), np.asarray(ref), rtol=1e-5, atol=1e-5), \
        (float(got), float(ref), kw)


if __name__ == "__main__":
    key = jax.random.PRNGKey(0)
    k1, k2, k3, k4, k5 = jax.random.split(key, 5)

    # Main config: N=2, C=4, H=W=16, per-class alpha, gamma=2
    N, C, H, W = 2, 4, 16, 16
    logits = jax.random.normal(k1, (N, C, H, W), dtype=jnp.float32)
    target = jax.random.randint(k2, (N, H, W), 0, C, dtype=jnp.int32)
    sprinkle = jax.random.uniform(k3, (N, H, W)) < 0.1     # exercise the 255 -> 0 remap
    target = jnp.where(sprinkle, 255, target)

    _check(logits, target, gamma=2.0, alpha=[0.25, 0.5, 0.75, 1.0],
           size_average=True, ignore_index=None)

    # No-alpha / gamma=0 / sum-reduction / ignore_index path
    _check(logits, target, gamma=0.0, alpha=None,
           size_average=False, ignore_index=0)

    # Partial tail block: HW=576 with tile_p=256 (grid_p=3, masked tail lanes)
    N2, C2, H2, W2 = 2, 4, 24, 24
    logits2 = jax.random.normal(k4, (N2, C2, H2, W2), dtype=jnp.float32)
    target2 = jax.random.randint(k5, (N2, H2, W2), 0, C2, dtype=jnp.int32)
    _check(logits2, target2, gamma=2.0, alpha=[0.25, 0.5, 0.75, 1.0],
           size_average=True, ignore_index=1, tile_p=256)

    print("KERNEL_OK")
</pallas_src>

<mosaic_0001>
module attributes {stable_mosaic.version = 11 : i64} {
  func.func @_focal_loss_kernel(%arg0: i32, %arg1: i32, %arg2: memref<4xf32, #tpu.memory_space<smem>>, %arg3: memref<1x4x256xf32, #tpu.memory_space<vmem>>, %arg4: memref<1x1x256xi32, #tpu.memory_space<vmem>>, %arg5: memref<1x1x1x128xf32, #tpu.memory_space<vmem>>) attributes {dimension_semantics = [#tpu.dimension_semantics<parallel>, #tpu.dimension_semantics<parallel>], iteration_bounds = array<i64: 2, 1>, scalar_prefetch = 1 : i64, scratch_operands = 0 : i64, tpu.core_type = #tpu.core_type<tc>, window_params = [{transform_indices = @transform_0, window_bounds = array<i64: 1, 4, 256>}, {transform_indices = @transform_1, window_bounds = array<i64: 1, 1, 256>}, {transform_indices = @transform_2, window_bounds = array<i64: 1, 1, 1, 128>}]} {
    %c0 = arith.constant 0 : index
    %c0_0 = arith.constant 0 : index
    %c0_1 = arith.constant 0 : index
    %0 = vector.load %arg3[%c0, %c0_0, %c0_1] : memref<1x4x256xf32, #tpu.memory_space<vmem>>, vector<1x4x256xf32>
    %1 = vector.shape_cast %0 : vector<1x4x256xf32> to vector<4x256xf32>
    %c0_2 = arith.constant 0 : index
    %c0_3 = arith.constant 0 : index
    %c0_4 = arith.constant 0 : index
    %2 = vector.load %arg4[%c0_2, %c0_3, %c0_4] : memref<1x1x256xi32, #tpu.memory_space<vmem>>, vector<1x1x256xi32>
    %3 = vector.shape_cast %2 : vector<1x1x256xi32> to vector<1x256xi32>
    %c255_i32 = arith.constant 255 : i32
    %4 = vector.broadcast %c255_i32 : i32 to vector<1x256xi32>
    %5 = arith.cmpi eq, %3, %4 : vector<1x256xi32>
    %c0_i32 = arith.constant 0 : i32
    %6 = vector.broadcast %c0_i32 : i32 to vector<1x256xi32>
    %7 = arith.select %5, %6, %3 : vector<1x256xi1>, vector<1x256xi32>
    %cst = arith.constant dense<0xFF800000> : vector<256xf32>
    %8 = vector.multi_reduction <maximumf>, %1, %cst [0] : vector<4x256xf32> to vector<256xf32>
    %9 = vector.shape_cast %8 : vector<256xf32> to vector<1x256xf32>
    %10 = vector.broadcast %9 : vector<1x256xf32> to vector<4x256xf32>
    %11 = arith.subf %1, %10 : vector<4x256xf32>
    %12 = math.exp %11 : vector<4x256xf32>
    %cst_5 = arith.constant dense<0.000000e+00> : vector<256xf32>
    %13 = vector.multi_reduction <add>, %12, %cst_5 [0] : vector<4x256xf32> to vector<256xf32>
    %14 = vector.shape_cast %13 : vector<256xf32> to vector<1x256xf32>
    %15 = math.log %14 : vector<1x256xf32>
    %16 = tpu.iota {dimensions = array<i32: 0>} : vector<4x256xi32>
    %17 = vector.broadcast %7 : vector<1x256xi32> to vector<4x256xi32>
    %18 = arith.cmpi eq, %16, %17 : vector<4x256xi32>
    %cst_6 = arith.constant 0.000000e+00 : f32
    %19 = vector.broadcast %cst_6 : f32 to vector<4x256xf32>
    %20 = arith.select %18, %11, %19 : vector<4x256xi1>, vector<4x256xf32>
    %cst_7 = arith.constant dense<0.000000e+00> : vector<256xf32>
    %21 = vector.multi_reduction <add>, %20, %cst_7 [0] : vector<4x256xf32> to vector<256xf32>
    %22 = vector.shape_cast %21 : vector<256xf32> to vector<1x256xf32>
    %23 = arith.subf %22, %15 : vector<1x256xf32>
    %24 = math.exp %23 : vector<1x256xf32>
    %cst_8 = arith.constant 0.000000e+00 : f32
    %25 = vector.broadcast %cst_8 : f32 to vector<1x256xf32>
    %c0_i32_9 = arith.constant 0 : i32
    %26 = vector.broadcast %c0_i32_9 : i32 to vector<1x256xi32>
    %27 = arith.cmpi eq, %7, %26 : vector<1x256xi32>
    %c0_10 = arith.constant 0 : index
    %28 = memref.load %arg2[%c0_10] : memref<4xf32, #tpu.memory_space<smem>>
    %29 = vector.broadcast %28 : f32 to vector<1x256xf32>
    %30 = arith.select %27, %29, %25 : vector<1x256xi1>, vector<1x256xf32>
    %c1_i32 = arith.constant 1 : i32
    %31 = vector.broadcast %c1_i32 : i32 to vector<1x256xi32>
    %32 = arith.cmpi eq, %7, %31 : vector<1x256xi32>
    %c1 = arith.constant 1 : index
    %33 = memref.load %arg2[%c1] : memref<4xf32, #tpu.memory_space<smem>>
    %34 = vector.broadcast %33 : f32 to vector<1x256xf32>
    %35 = arith.select %32, %34, %30 : vector<1x256xi1>, vector<1x256xf32>
    %c2_i32 = arith.constant 2 : i32
    %36 = vector.broadcast %c2_i32 : i32 to vector<1x256xi32>
    %37 = arith.cmpi eq, %7, %36 : vector<1x256xi32>
    %c2 = arith.constant 2 : index
    %38 = memref.load %arg2[%c2] : memref<4xf32, #tpu.memory_space<smem>>
    %39 = vector.broadcast %38 : f32 to vector<1x256xf32>
    %40 = arith.select %37, %39, %35 : vector<1x256xi1>, vector<1x256xf32>
    %c3_i32 = arith.constant 3 : i32
    %41 = vector.broadcast %c3_i32 : i32 to vector<1x256xi32>
    %42 = arith.cmpi eq, %7, %41 : vector<1x256xi32>
    %c3 = arith.constant 3 : index
    %43 = memref.load %arg2[%c3] : memref<4xf32, #tpu.memory_space<smem>>
    %44 = vector.broadcast %43 : f32 to vector<1x256xf32>
    %45 = arith.select %42, %44, %40 : vector<1x256xi1>, vector<1x256xf32>
    %46 = arith.mulf %23, %45 : vector<1x256xf32>
    %cst_11 = arith.constant 1.000000e+00 : f32
    %47 = vector.broadcast %cst_11 : f32 to vector<1x256xf32>
    %48 = arith.subf %47, %24 : vector<1x256xf32>
    %49 = arith.mulf %48, %48 : vector<1x256xf32>
    %cst_12 = arith.constant -1.000000e+00 : f32
    %50 = vector.broadcast %cst_12 : f32 to vector<1x256xf32>
    %51 = arith.mulf %50, %49 : vector<1x256xf32>
    %52 = arith.mulf %51, %46 : vector<1x256xf32>
    %c-1_i32 = arith.constant -1 : i32
    %53 = vector.broadcast %c-1_i32 : i32 to vector<1x256xi32>
    %54 = arith.cmpi ne, %7, %53 : vector<1x256xi32>
    %cst_13 = arith.constant 0.000000e+00 : f32
    %55 = vector.broadcast %cst_13 : f32 to vector<1x256xf32>
    %56 = arith.select %54, %52, %55 : vector<1x256xi1>, vector<1x256xf32>
    %57 = vector.shape_cast %56 : vector<1x256xf32> to vector<1x1x256xf32>
    %cst_14 = arith.constant dense<0.000000e+00> : vector<1xf32>
    %58 = vector.multi_reduction <add>, %57, %cst_14 [1, 2] : vector<1x1x256xf32> to vector<1xf32>
    %59 = vector.shape_cast %58 : vector<1xf32> to vector<1x1x1xf32>
    %60 = vector.extract %59[0, 0, 0] : f32 from vector<1x1x1xf32>
    %61 = tpu.iota {dimensions = array<i32: 1>} : vector<1x128xi32>
    %c0_i32_15 = arith.constant 0 : i32
    %62 = vector.broadcast %c0_i32_15 : i32 to vector<1x128xi32>
    %63 = arith.cmpi eq, %61, %62 : vector<1x128xi32>
    %cst_16 = arith.constant 0.000000e+00 : f32
    %64 = vector.broadcast %60 : f32 to vector<1x128xf32>
    %65 = vector.broadcast %cst_16 : f32 to vector<1x128xf32>
    %66 = arith.select %63, %64, %65 : vector<1x128xi1>, vector<1x128xf32>
    %c0_17 = arith.constant 0 : index
    %c0_18 = arith.constant 0 : index
    %c0_19 = arith.constant 0 : index
    %c0_20 = arith.constant 0 : index
    %67 = vector.load %arg5[%c0_17, %c0_18, %c0_19, %c0_20] : memref<1x1x1x128xf32, #tpu.memory_space<vmem>>, vector<1x1x1x128xf32>
    %68 = vector.shape_cast %67 : vector<1x1x1x128xf32> to vector<1x128xf32>
    %69 = vector.shape_cast %66 : vector<1x128xf32> to vector<1x1x1x128xf32>
    tpu.vector_store %arg5[%c0_17, %c0_18, %c0_19, %c0_20], %69 {strides = array<i32>} : memref<1x1x1x128xf32, #tpu.memory_space<vmem>>, vector<1x1x1x128xf32>,
    return
  }
  func.func @transform_0(%arg0: i32, %arg1: i32, %arg2: memref<4xf32, #tpu.memory_space<smem>>) -> (i32, i32, i32) {
    %c0_i32 = arith.constant 0 : i32
    %c0_i32_0 = arith.constant 0 : i32
    return %arg0, %c0_i32, %arg1 : i32, i32, i32
  }
  func.func @transform_1(%arg0: i32, %arg1: i32, %arg2: memref<4xf32, #tpu.memory_space<smem>>) -> (i32, i32, i32) {
    %c0_i32 = arith.constant 0 : i32
    %c0_i32_0 = arith.constant 0 : i32
    return %arg0, %c0_i32, %arg1 : i32, i32, i32
  }
  func.func @transform_2(%arg0: i32, %arg1: i32, %arg2: memref<4xf32, #tpu.memory_space<smem>>) -> (i32, i32, i32, i32) {
    %c0_i32 = arith.constant 0 : i32
    %c0_i32_0 = arith.constant 0 : i32
    %c0_i32_1 = arith.constant 0 : i32
    return %arg0, %arg1, %c0_i32, %c0_i32_0 : i32, i32, i32, i32
  }
}

</mosaic_0001>

<bundles_post_ra>
// kernel: tpu_custom_call.1
= control target key start
LH: loop header
LB: loop body
LE: loop exit
PB: predicated region body
PF: predicated region fallthrough
CT: control target
= control target key end

     0   :  { %s773_s12 = smov [#allocation3]   ;;  %s1006_s0 = inlined_call_operand.hbm [shape: f32[4], index: 0, kind: input, shape index: {}]   ;;  %s1007_s1 = inlined_call_operand.hbm [shape: f32[2,4,256], index: 1, kind: input, shape index: {}]   ;;  %s1008_s2 = inlined_call_operand.hbm [shape: s32[2,1,256], index: 2, kind: input, shape index: {}]   ;;  %s1009_s3 = inlined_call_operand.hbm [shape: f32[2,1,1,128], index: 3, kind: output, shape index: {}]  }
   0x1   :  { %9 = dma.hbm_to_smem %s1006_s0, 16, %s773_s12, [#allocation2] }
   0x2   :  { %735 = dma.done.wait [#allocation2], 16 }
   0x3   :  { %736 = vsyncadd [#allocation2], 4294967280 }
   0x4   :  { %11 = sfence }
   0x5   :  { %12 = vsyncpa [#allocation5], 0 }
   0x6   :  { %14 = vsyncpa [#allocation5 + $0x1], 0 }
   0x7   :  { %15 = vsyncpa [#allocation8], 0 }
   0x8   :  { %17 = vsyncpa [#allocation8 + $0x1], 0 }
   0x9   :  { %18 = vsyncpa [#allocation6], 0 }
   0xa   :  { %20 = vsyncpa [#allocation6 + $0x1], 0  ;;  %s801_s15 = smov 0   ;;  %s803_s16 = smov 0  }
   0xb   :  { %s805_s17 = smov 0   ;;  %s807_s18 = smov 0  }
   0xc   :  { %s809_s19 = smov 0   ;;  %s811_s0 = smov 0  }
   0xd LB: > { %s518_s20 = sadd.s32 4294967295, %s771_s0   ;;  %s519_s21 = sadd.s32 4294967294, %s771_s0   ;;  %s771_s0 = sphi %s811_s0, %s26_s0   ;;  %s767_s19 = sphi %s809_s19, %s1021_s19   ;;  %s763_s18 = sphi %s807_s18, %s1020_s18   ;;  %s759_s17 = sphi %s805_s17, %s1019_s17   ;;  %s755_s16 = sphi %s803_s16, %s1018_s16   ;;  %s751_s15 = sphi %s801_s15, %s1017_s15  }
   0xe   : > { %s38_s22 = sadd.s32 1, %s767_s19  ;;  %s47_s23 = sadd.s32 1, %s759_s17 }
   0xf   : > { %p40_p0 = scmp.ge.s32.totalorder %s38_s22, 2  ;;  %p54_p1 = scmp.ne.s32.totalorder %s759_s17, %s755_s16 }
  0x10   : > { %p55_p2 = scmp.eq.s32.totalorder %s771_s0, 0  ;;  %p60_p3 = scmp.ne.s32.totalorder %s755_s16, %s751_s15 }
  0x11   : > { %s1023_s22 = smov (%p40_p0, %s38_s22), 0  ;;  %p61_p5 = scmp.eq.s32.totalorder %s518_s20, 0 }
  0x12   : > { %p842_p4 = por %p55_p2, %p54_p1  ;;  %s42_s25 = ssub.s32 %s767_s19, %s1023_s22 }
  0x13   : > { %p114_p6 = scmp.eq.s32.totalorder %s518_s20, 1  ;;  %p45_p7 = scmp.eq.s32.totalorder %s42_s25, 0 }
  0x14   : > { %p848_p8 = por %p61_p5, %p60_p3  ;;  %p120_p10 = scmp.eq.s32.totalorder %s519_s21, 1 }
  0x15   : > { %p852_p9 = por %p114_p6, %p54_p1  ;;  %p558_p13 = scmp.lt.s32.totalorder %s771_s0, 2 }
  0x16   : > { %s857_s28 = scalar_select %p45_p7, %s759_s17, %s47_s23  }
  0x17   : > { %p859_p11 = por %p120_p10, %p60_p3  ;;  %s866_s30 = sand.u32 1, %s759_s17  }
  0x18   : > { %s522_s4 = sshll.u32 %s866_s30, 3  ;;  %s537_s5 = sshll.u32 %s767_s19, 7 }
  0x19   : > { %s152_s8 = scalar_lea.hbm %s1007_s1, %s537_s5  ;;  %s144_s9 = scalar_lea.vmem [#allocation4], %s522_s4 }
  0x1a   : > { %s154_s10 = sshll.u32 %s144_s9, 4  ;;  %p875_p0 = pnand %p558_p13, %p842_p4  ;;  %s155_s10 = int_to_ptr.vmem [resolvable:$true] %s154_s10 }
  0x1b   : > { %p528_p1 = scmp.ge.s32.totalorder %s771_s0, 1  ;;  %p180_p2 = scmp.lt.s32.totalorder %s771_s0, 3 }
  0x1c   : > { %s141_s12 = scalar_lea.sflag [#allocation5], %s866_s30  ;;  %p631_p3 = pneg %p875_p0 }
  0x1d   : > { %s642_s13 = scalar_lea.vmem %s155_s10, 128  ;;  %s774_s14 = smov [#allocation4]  }
  0x1e   : > { %p643_p5 = scmp.ne.s32.totalorder %s155_s10, %s642_s13  ;;  %s647_s20 = sshll.u32 %s774_s14, 4  ;;  %s648_s20 = int_to_ptr.vmem [resolvable:$false] %s647_s20 }
  0x1f   : > { %s649_s21 = scalar_lea.vmem %s648_s20, 256  ;;  %p650_p4 = scmp.lt.s32.totalorder %s155_s10, %s648_s20 }
  0x20   : > { %p645_p6 = pnand %p643_p5, %p631_p3  ;;  %p651_p10 = scmp.lt.s32.totalorder %s649_s21, %s642_s13 }
  0x22   : > { %p646_p7 = pneg %p645_p6  ;;  %p652_p13 = por %p651_p10, %p650_p4 }
  0x24   : > { %p653_p12 = pnand %p652_p13, %p646_p7 }
  0x26   : > { %656 = shalt.err (!%p653_p12)
}
  0x27   : > { %550 = dma.hbm_to_vmem [thread:$0]  (!%p875_p0), %s152_s8, 128, %s155_s10, %s141_s12  }
  0x28   : > { %p893_p5 = pnand %p528_p1, %p180_p2  ;;  %s525_s24 = sshll.u32 %s866_s30, 1 }
  0x29   : > { %s538_s25 = sshll.u32 %s767_s19, 5  ;;  %s165_s7 = scalar_lea.vmem [#allocation7], %s525_s24 }
  0x2a   : > { %s173_s6 = scalar_lea.hbm %s1008_s2, %s538_s25  ;;  %s175_s9 = sshll.u32 %s165_s7, 4  ;;  %s176_s9 = int_to_ptr.vmem [resolvable:$true] %s175_s9 }
  0x2b   : > { %s162_s13 = scalar_lea.sflag [#allocation8], %s866_s30  ;;  %s670_s14 = scalar_lea.vmem %s176_s9, 32 }
  0x2c   : > { %p671_p12 = scmp.ne.s32.totalorder %s176_s9, %s670_s14  ;;  %s775_s8 = smov [#allocation7]  }
  0x2d   : > { %s675_s10 = sshll.u32 %s775_s8, 4  ;;  %s676_s10 = int_to_ptr.vmem [resolvable:$false] %s675_s10 }
  0x2e   : > { %p673_p6 = pnand %p671_p12, %p631_p3  ;;  %s677_s12 = scalar_lea.vmem %s676_s10, 64 }
  0x2f   : > { %p678_p1 = scmp.lt.s32.totalorder %s176_s9, %s676_s10  ;;  %p679_p2 = scmp.lt.s32.totalorder %s677_s12, %s670_s14 }
  0x30   : > { %p674_p7 = pneg %p673_p6 }
  0x31   : > { %p680_p4 = por %p679_p2, %p678_p1 }
  0x33   : > { %p681_p10 = pnand %p680_p4, %p674_p7 }
  0x35   : > { %684 = shalt.err (!%p681_p10)
}
  0x36   : > { %553 = dma.hbm_to_vmem [thread:$0]  (!%p875_p0), %s173_s6, 32, %s176_s9, %s162_s13  }
  0x37   : > { %184 = sbr.rel (%p893_p5) target bundleno = 384 (0x180), region = 28  ;;  %s911_s30 = sand.u32 (!%p893_p5), 1, %s755_s16  }
  0x38   : > { %s529_s20 = sshll.u32 (!%p893_p5), %s911_s30, 3  ;;  %s187_s21 = scalar_lea.sflag (!%p893_p5), [#allocation5], %s911_s30 }
  0x39   : > { %s190_s24 = scalar_lea.vmem (!%p893_p5), [#allocation4], %s529_s20 }
  0x3c   : > { %738 = dma.done.wait (%p848_p8), %s187_s21, 128  }
  0x3d   : > { %740 = vsyncadd (%p848_p8), %s187_s21, 4294967168  ;;  %s530_s11 = sshll.u32 %s911_s30, 1  ;;  %s196_s23 = scalar_lea.sflag [#allocation8], %s911_s30 }
  0x3e   : > { %s199_s25 = scalar_lea.vmem [#allocation7], %s530_s11 }
  0x3f   : > { %742 = dma.done.wait (%p848_p8), %s196_s23, 32  }
  0x40   : > { %744 = vsyncadd (%p848_p8), %s196_s23, 4294967264  ;;  %vm233_vm0 = vcmask 1043456   ;;  %v226_v0 = vld [vmem:[%s190_s24] sm:$0xff]  ;;  %v276_v17 = vlaneseq  ;;  %v227_v19 = vld [vmem:[%s199_s25] sm:$0x3]  ;;  %s314_s26 = sld [smem:[#allocation3]] }
  0x41   : > { %v231_v1 = vcombine.high %v226_v0, %v226_v0  ;;  %v234_v2 = vsel %vm233_vm0, %v226_v0, -inf  ;;  %vm228_vm1 = vcmp.eq.s32.totalorder %v227_v19, 255  ;;  %s531_s4 = sld [smem:[#allocation3 + $0x1]]  ;;  %vm381_vm9 = vcmask 1040384   ;;  %s534_s7 = sshll.u32 %s763_s18, 4 }
  0x42   : > { %v235_v3 = vrot.slane %v234_v2, 4  ;;  %v928_v21 = vshrl.u32 %v276_v17, 7  ;;  %v933_v23 = vsel %vm228_vm1, 0, %v227_v19  ;;  %s532_s5 = sld [smem:[#allocation3 + $0x2]]  ;;  %s223_s9 = scalar_lea.vmem [#allocation9], %s911_s30 }
  0x43   : > { %v241_v4 = vsel %vm233_vm0, %v231_v1, -inf  ;;  %vm313_vm4 = vcmp.eq.s32.totalorder %v933_v23, 0  ;;  %s533_s6 = sld [smem:[#allocation3 + $0x3]]  ;;  %vm317_vm5 = vcmp.eq.s32.totalorder %v933_v23, 1  ;;  %vm321_vm6 = vcmp.eq.s32.totalorder %v933_v23, 2  ;;  %s414_s13 = sshll.u32 %s223_s9, 4  ;;  %s415_s13 = int_to_ptr.vmem [resolvable:$true] %s414_s13 }
  0x44   : > { %v236_v5 = vmax.f32 %v234_v2, %v235_v3  ;;  %v242_v6 = vrot.slane %v241_v4, 4  ;;  %v931_v22 = vsub.s32 0, %v928_v21  ;;  %v936_v24 = vsub.s32 1, %v928_v21  ;;  %s964_s12 = scalar_lea.hbm %s1009_s3, %s534_s7  ;;  %s401_s20 = scalar_lea.sflag [#allocation6], %s911_s30 }
  0x45   : > { %vm325_vm7 = vcmp.eq.s32.totalorder %v933_v23, 3  ;;  %vm350_vm8 = vcmp.ne.s32.totalorder %v933_v23, 4294967295  ;;  %s685_s21 = scalar_lea.vmem %s415_s13, 16  ;;  %s777_s18 = smov [#allocation9]  }
  0x46   : > { %v237_v7 = vrot.slane %v236_v5, 2  ;;  %v243_v8 = vmax.f32 %v241_v4, %v242_v6  ;;  %v281_v25 = vrot.slane %v933_v23, %v931_v22  ;;  %v285_v26 = vrot.slane %v933_v23, %v936_v24  ;;  %p686_p8 = scmp.ne.s32.totalorder %s415_s13, %s685_s21  ;;  %s689_s24 = sshll.u32 %s777_s18, 4  ;;  %s690_s24 = int_to_ptr.vmem [resolvable:$false] %s689_s24 }
  0x47   : > { %v315_v1 = vstv %s314_s26  ;;  %v319_v4 = vstv %s531_s4  ;;  %s691_s11 = scalar_lea.vmem %s690_s24, 32  ;;  %p692_p13 = scmp.lt.s32.totalorder %s415_s13, %s690_s24 }
  0x48   : > { %v238_v9 = vmax.f32 %v236_v5, %v237_v7  ;;  %v244_v10 = vrot.slane %v243_v8, 2  ;;  %vm286_vm2 = vcmp.eq.s32.totalorder %v928_v21, %v281_v25  ;;  %vm287_vm3 = vcmp.eq.s32.totalorder %v928_v21, %v285_v26  ;;  %p687_p0 = pnand %p686_p8, %p852_p9  ;;  %p693_p5 = scmp.lt.s32.totalorder %s691_s11, %s685_s21 }
  0x49   : > { %v316_v6 = vsel %vm313_vm4, %v315_v1, 0.0  ;;  %v323_v7 = vstv %s532_s5 }
  0x4a   : > { %v239_v11 = vrot.slane %v238_v9, 1  ;;  %v245_v12 = vmax.f32 %v243_v8, %v244_v10  ;;  %v320_v8 = vsel %vm317_vm5, %v319_v4, %v316_v6  ;;  %v327_v10 = vstv %s533_s6  ;;  %p688_p3 = pneg %p687_p0  ;;  %p694_p12 = por %p693_p5, %p692_p13 }
  0x4c   : > { %v240_v13 = vmax.f32 %v238_v9, %v239_v11  ;;  %v246_v14 = vrot.slane %v245_v12, 1  ;;  %v324_v9 = vsel %vm321_vm6, %v323_v7, %v320_v8  ;;  %p695_p6 = pnand %p694_p12, %p688_p3 }
  0x4d   : > { %v328_v11 = vsel %vm325_vm7, %v327_v10, %v324_v9 }
  0x4e   : > { %v247_v15 = vmax.f32 %v245_v12, %v246_v14  ;;  %v333_v12 = vrot.slane %v328_v11, %v931_v22  ;;  %v337_v14 = vrot.slane %v328_v11, %v936_v24 }
  0x50   : > { %v250_v16 = vcombine.low %v240_v13, %v247_v15 }
  0x52   : > { %v252_v18 = vsub.f32 %v226_v0, %v250_v16  ;;  %v776_v16 = vmov 1966171168  }
  0x54   : > { %v253_v20 = vmul.f32 1.442695, %v252_v18  ;;  %v289_v27 = vcombine.high %v252_v18, %v252_v18  ;;  %v291_v29 = vsel %vm286_vm2, %v252_v18, 0.0  ;;  %v355_v18 = vunpack.c.l.s4 %v776_v16 }
  0x55   : > { %v293_v35 = vsel %vm233_vm0, %v291_v29, 0.0 }
  0x56   : > { %611 = vpow2.f32 %v253_v20  ;;  %v292_v33 = vsel %vm287_vm3, %v289_v27, 0.0  ;;  %v294_v41 = vrot.slane %v293_v35, 4 }
  0x57   : > { %v300_v38 = vsel %vm233_vm0, %v292_v33, 0.0 }
  0x58   : > { %v301_v44 = vrot.slane %v300_v38, 4  ;;  %v295_v47 = vadd.f32 %v294_v41, %v293_v35 }
  0x5a   : > { %v302_v50 = vadd.f32 %v301_v44, %v300_v38  ;;  %v296_v52 = vrot.slane %v295_v47, 2 }
  0x5c   : > { %v303_v53 = vrot.slane %v302_v50, 2  ;;  %v297_v54 = vadd.f32 %v296_v52, %v295_v47 }
  0x5e   : > { %v304_v55 = vadd.f32 %v303_v53, %v302_v50  ;;  %v298_v56 = vrot.slane %v297_v54, 1 }
  0x60   : > { %v305_v57 = vrot.slane %v304_v55, 1  ;;  %v299_v58 = vadd.f32 %v298_v56, %v297_v54 }
  0x62   : > { %v306_v61 = vadd.f32 %v305_v57, %v304_v55 }
  0x63   : > { %v612_v28 = vpop.eup %611 }
  0x64   : > { %v256_v30 = vcombine.high %v612_v28, %v612_v28  ;;  %v258_v31 = vsel %vm233_vm0, %v612_v28, 0.0 }
  0x65   : > { %v259_v32 = vrot.slane %v258_v31, 4 }
  0x66   : > { %v265_v34 = vsel %vm233_vm0, %v256_v30, 0.0  ;;  %v356_v30 = vunpack.c.0.s8 %v355_v18 }
  0x67   : > { %v260_v36 = vadd.f32 %v259_v32, %v258_v31  ;;  %v266_v37 = vrot.slane %v265_v34, 4 }
  0x69   : > { %v261_v39 = vrot.slane %v260_v36, 2  ;;  %v267_v40 = vadd.f32 %v266_v37, %v265_v34  ;;  %v359_v34 = vsub.s32 %v356_v30, %v928_v21 }
  0x6b   : > { %v262_v42 = vadd.f32 %v261_v39, %v260_v36  ;;  %v268_v43 = vrot.slane %v267_v40, 2 }
  0x6d   : > { %v263_v45 = vrot.slane %v262_v42, 1  ;;  %v269_v46 = vadd.f32 %v268_v43, %v267_v40 }
  0x6f   : > { %v264_v48 = vadd.f32 %v263_v45, %v262_v42  ;;  %v270_v49 = vrot.slane %v269_v46, 1 }
  0x71   : > { %v271_v51 = vadd.f32 %v270_v49, %v269_v46  ;;  %613 = vlog2.f32 %v264_v48  ;;  %v395_v49 = vand.u32 127, %v276_v17 }
  0x73   : > { %615 = vlog2.f32 %v271_v51  ;;  %vm396_vm10 = vcmp.eq.s32.totalorder %v395_v49, 0 }
  0x7e   : > { %v614_v59 = vpop.eup %613 }
  0x7f   : > { %v273_v60 = vmul.f32 0.6931472, %v614_v59 }
  0x80   : > { %v616_v62 = vpop.eup %615 }
  0x81   : > { %v275_v63 = vmul.f32 0.6931472, %v616_v62  ;;  %v307_v0 = vsub.f32 %v299_v58, %v273_v60 }
  0x83   : > { %v308_v2 = vsub.f32 %v306_v61, %v275_v63  ;;  %v309_v3 = vmul.f32 1.442695, %v307_v0  ;;  %v340_v20 = vmul.f32 %v333_v12, %v307_v0 }
  0x85   : > { %617 = vpow2.f32 %v309_v3  ;;  %v311_v5 = vmul.f32 1.442695, %v308_v2  ;;  %v341_v27 = vmul.f32 %v337_v14, %v308_v2 }
  0x87   : > { %619 = vpow2.f32 %v311_v5 }
  0x92   : > { %v618_v13 = vpop.eup %617 }
  0x93   : > { %v342_v15 = vsub.f32 1.0, %v618_v13 }
  0x94   : > { %v620_v19 = vpop.eup %619 }
  0x95   : > { %v343_v25 = vsub.f32 1.0, %v620_v19  ;;  %v344_v26 = vmul.f32 %v342_v15, %v342_v15 }
  0x97   : > { %v345_v28 = vmul.f32 %v343_v25, %v343_v25  ;;  %v346_v29 = vmul.f32 -1.0, %v344_v26 }
  0x99   : > { %v347_v31 = vmul.f32 -1.0, %v345_v28  ;;  %v348_v32 = vmul.f32 %v346_v29, %v340_v20 }
  0x9b   : > { %v349_v33 = vmul.f32 %v347_v31, %v341_v27 }
  0x9d   : > { %v353_v35 = vcombine.low %v348_v32, %v349_v33 }
  0x9f   : > { %v360_v36 = vrot.slane %v353_v35, %v359_v34 }
  0xa1   : > { %v367_v37 = vrot.slane %v360_v36, %v359_v34 }
  0xa3   : > { %v369_v38 = vsel %vm350_vm8, %v367_v37, 0.0 }
  0xa4   : > { %v374_v39 = vrot.slane %v369_v38, %v931_v22  ;;  %v378_v40 = vrot.slane %v369_v38, %v936_v24 }
  0xa6   : > { %v382_v41 = vsel %vm381_vm9, %v374_v39, 0.0  ;;  %v383_v42 = vsel %vm381_vm9, %v378_v40, 0.0 }
  0xa7   : > { %v384_v43 = vadd.f32 %v383_v42, %v382_v41 }
  0xa9   : > { %385 = vadd.xlane.f32.xlu0 %v384_v43 }
 0x132   : > { %v386_v44 = vpop.xlane.xlu0 %385 }
 0x133   : > { %v387_v45 = vrot.slane %v386_v44, 4 }
 0x135   : > { %v388_v21 = vadd.f32 %v387_v45, %v386_v44 }
 0x137   : > { %v389_v46 = vrot.slane %v388_v21, 2 }
 0x139   : > { %v390_v47 = vadd.f32 %v389_v46, %v388_v21 }
 0x13b   : > { %v391_v23 = vrot.slane %v390_v47, 1 }
 0x13d   : > { %v392_v48 = vadd.f32 %v391_v23, %v390_v47 }
 0x13f   : > { %539 = vpush %v392_v48 }
 0x170   : > { %s540_s14 = spop %539 }
 0x171   : > { %v397_v22 = vstv %s540_s14 }
 0x172   : > { %v398_v24 = vsel %vm396_vm10, %v397_v22, 0.0 }
 0x173   : > { %399 = vst [vmem:[%s223_s9] sm:$0x1] %v398_v24 }
 0x174   : > { %698 = shalt.err (!%p695_p6)
}
 0x175   : > { %s699_s23 = scalar_lea.hbm %s964_s12, 16  ;;  %s703_s26 = scalar_lea.hbm %s1009_s3, 32 }
 0x176   : > { %p700_p7 = scmp.ne.s32.totalorder %s964_s12, %s699_s23  ;;  %p704_p4 = scmp.lt.s32.totalorder %s964_s12, %s1009_s3 }
 0x177   : > { %p705_p10 = scmp.lt.s32.totalorder %s703_s26, %s699_s23 }
 0x178   : > { %p701_p1 = pnand %p700_p7, %p852_p9 }
 0x179   : > { %p706_p8 = por %p705_p10, %p704_p4 }
 0x17a   : > { %p702_p2 = pneg %p701_p1 }
 0x17c   : > { %p707_p0 = pnand %p706_p8, %p702_p2 }
 0x17e   : > { %710 = shalt.err (!%p707_p0)
}
 0x17f   : > { %545 = dma.vmem_to_hbm [thread:$0]  (%p852_p9), %s415_s13, 16, %s964_s12, %s401_s20  }
 0x180 PF: > { %s426_s6 = sand.u32 1, %s751_s15   ;;  %p1016_p3 = scmp.ge.s32.totalorder %s771_s0, 2 }
 0x181   : > { %s427_s7 = scalar_lea.sflag [#allocation6], %s426_s6 }
 0x182   : > { %p555_p13 = pnand %p1016_p3, %p859_p11 }
 0x184   : > { %p556_p5 = pneg %p555_p13 }
 0x186   : > { %746 = dma.done.wait (%p556_p5), %s427_s7, 16  }
 0x187   : > { %748 = vsyncadd (%p556_p5), %s427_s7, 4294967280  ;;  %s26_s0 = sadd.s32 1, %s771_s0   ;;  %s1017_s15 = smov %s755_s16 }
 0x188   : > { %p23_p12 = scmp.ge.s32.totalorder %s26_s0, 4   ;;  %s1018_s16 = smov %s759_s17 }
 0x189   : > { %s1019_s17 = smov %s857_s28  ;;  %s1020_s18 = smov %s767_s19 }
 0x18a   : > { %s1021_s19 = smov %s1023_s22  ;;  %25 = sbr.rel (!%p23_p12) target bundleno = 13 (0xd), region = 86 }
 0x18f   :  { %431 = vsyncpa [#allocation5], 1 }
 0x190   :  { %433 = vsyncpa [#allocation5 + $0x1], 1 }
 0x191   :  { %434 = vsyncpa [#allocation8], 1 }
 0x192   :  { %436 = vsyncpa [#allocation8 + $0x1], 1 }
 0x193   :  { %437 = vsyncpa [#allocation6], 1 }
 0x194   :  { %439 = vsyncpa [#allocation6 + $0x1], 1 }

</bundles_post_ra>
